<compile_context>
chip_gen: v6e
topology: v6e:2x2x1
jax: 0.10.0
libtpu: 0.0.40
codegen_flags: <defaults>
</compile_context>

<pallas_src>
import functools

import jax
import jax.numpy as jnp
from jax.experimental import pallas as pl
from jax.experimental.pallas import tpu as pltpu


# ----------------------------- Pallas kernel -------------------------------
def _conv_block_kernel(x_ref, w1_ref, b1_ref, a1_ref,
                       wd_ref, bd_ref, a2_ref,
                       wrs_ref, brs_ref,
                       out_ref,
                       *, T, W, K, pad, dil, mxu_dtype):
    L = x_ref.shape[-1]                    # lanes per grid step (= Bb * W)

    w1 = w1_ref[...]                       # (H, Cio)   mxu_dtype
    b1 = b1_ref[...]                       # (H, 1)     f32
    bd = bd_ref[...]                       # (H, 1)     f32
    wrs = wrs_ref[...]                     # (Cout, H)  mxu_dtype (res ++ skip)
    brs = brs_ref[...]                     # (Cout, 1)  f32
    a1 = a1_ref[0]                         # PReLU scalars from SMEM
    a2 = a2_ref[0]

    # pointwise 1x1 conv over the full folded lane width -> PReLU (one matmul)
    h1 = jnp.dot(w1, x_ref[...], preferred_element_type=jnp.float32) + b1
    h1 = jnp.where(h1 > 0, h1, a1 * h1)

    # Single (1, L) validity mask: zero wrapper-padded columns (lane % W >= T).
    # This (a) makes padding contribute zero to the depthwise conv and
    # (b) guarantees lanes rolled in across segment/block boundaries are zero
    # (wrapper enforces W >= T + pad).
    lane = jax.lax.broadcasted_iota(jnp.int32, (1, L), 1)
    valid = ((lane % W) < T).astype(h1.dtype)
    h1 = h1 * valid

    # depthwise conv (groups = hidden) via XLU lane rolls
    h2 = None
    for k in range(K):
        off = k * dil - pad
        shifted = h1 if off == 0 else pltpu.roll(h1, (-off) % L, axis=1)
        term = wd_ref[:, k:k + 1] * shifted
        h2 = term if h2 is None else h2 + term
    h2 = h2 + bd
    h2 = jnp.where(h2 > 0, h2, a2 * h2)

    # fused residual + skip pointwise convs: one MXU matmul, stacked output rows
    rs = jnp.dot(wrs, h2.astype(mxu_dtype),
                 preferred_element_type=jnp.float32) + brs
    out_ref[...] = rs.astype(out_ref.dtype)
    # NOTE: output lanes [T_out, W) of each segment contain garbage derived
    # from the padding; the wrapper slices them off.  Never alias/consume the
    # unsliced kernel output.


# ------------------------------ helpers ------------------------------------
def _vmem_limit_bytes():
    """Scoped-VMEM limit derived from the physical VMEM of the current chip."""
    try:
        phys = pltpu.get_tpu_info().vmem_capacity_bytes
    except Exception:
        phys = None
    if phys is None:
        phys = 64 * 1024 * 1024
    if phys >= 128 * 1024 * 1024:          # v5e / v6e
        return 96 * 1024 * 1024
    return 48 * 1024 * 1024                # v7x-class (64 MiB physical)


def _pick_batch_block(B, W, H, Cio, Cout, vmem_limit, target_lanes=512):
    """Batch segments per grid step: reach >= target_lanes lanes/step under a
    rough VMEM cap; prefer leaving >= 2 grid steps (v7x megacore)."""
    # rough bytes/lane: double-buffered in/out blocks + f32 intermediates (h1,h2,...)
    per_lane = 2 * 2 * (Cio + Cout) * 4 + 4 * H * 4
    max_lanes = max(W, (vmem_limit * 3 // 4) // per_lane)
    divs = [d for d in range(1, B + 1) if B % d == 0 and d * W <= max_lanes]
    if not divs:
        return 1
    for d in divs:                                   # smallest block hitting the
        if d * W >= target_lanes and B // d >= 2:    # target with >= 2 tiles
            return d
    for d in divs:                                   # else smallest hitting target
        if d * W >= target_lanes:
            return d
    return divs[-1]                                  # else biggest allowed block


# ------------------------------ wrapper ------------------------------------
def conv_block(x, params, *, kernel_size, padding, dilation,
               weight_dtype=jnp.float32, batch_block=None, no_residual=False,
               out_dtype=None):
    """x: (B, Cio, T).  Returns (residual, skip), each (B, Cio, T_out).
    With no_residual=True returns (None, skip), matching the PyTorch module."""
    B, Cio, T = x.shape
    w1, b1, a1, wd, bd, a2, wr, br, ws, bs = params
    H = w1.shape[0]
    K = kernel_size
    T_out = T + 2 * padding - dilation * (K - 1)
    assert T_out >= 1
    out_dtype = out_dtype if out_dtype is not None else x.dtype

    # Per-batch working width: multiple of 128 (lane-dense, unmasked vst),
    # >= T + padding (roll-wrap correctness), >= T_out (output fits).
    W = max(T + padding, T_out)
    W = -(-W // 128) * 128

    # bf16 path: cast x in the wrapper -> halves HBM read traffic; MXU bf16,
    # accumulation stays fp32.
    bf16 = jnp.dtype(weight_dtype) == jnp.dtype(jnp.bfloat16)
    io_dtype = jnp.bfloat16 if bf16 else x.dtype

    # Fold batch into the lane axis: (B, Cio, T) -> (Cio, B*W), zero tail pad.
    xt = jnp.transpose(x, (1, 0, 2)).astype(io_dtype)        # (Cio, B, T)
    xt = jnp.pad(xt, ((0, 0), (0, 0), (0, W - T)))           # (Cio, B, W)
    xt = xt.reshape(Cio, B * W)

    # Fuse residual + skip 1x1 weights into a single stacked matmul.
    if no_residual:
        wrs = ws.astype(weight_dtype)
        brs = bs.astype(jnp.float32)
    else:
        wrs = jnp.concatenate([wr, ws], axis=0).astype(weight_dtype)
        brs = jnp.concatenate([br, bs], axis=0).astype(jnp.float32)
    Cout = wrs.shape[0]
    w1c = w1.astype(weight_dtype)

    # PReLU scalars -> SMEM.
    a1s = jnp.reshape(a1, (1,)).astype(jnp.float32)
    a2s = jnp.reshape(a2, (1,)).astype(jnp.float32)

    vmem_limit = _vmem_limit_bytes()
    Bb = batch_block if batch_block is not None else _pick_batch_block(
        B, W, H, Cio, Cout, vmem_limit)
    assert B % Bb == 0
    L = Bb * W

    kernel = functools.partial(_conv_block_kernel, T=T, W=W, K=K, pad=padding,
                               dil=dilation, mxu_dtype=weight_dtype)

    full = lambda shape: pl.BlockSpec(shape, lambda i: (0,) * len(shape))
    smem_scalar = pl.BlockSpec(memory_space=pltpu.MemorySpace.SMEM)

    grid_spec = pltpu.PrefetchScalarGridSpec(
        num_scalar_prefetch=0,
        grid=(B // Bb,),
        in_specs=[
            pl.BlockSpec((Cio, L), lambda i: (0, i)),     # x (batch folded)
            full((H, Cio)),                               # w1
            full((H, 1)),                                 # b1
            smem_scalar,                                  # PReLU alpha1
            full((H, K)),                                 # wd (depthwise)
            full((H, 1)),                                 # bd
            smem_scalar,                                  # PReLU alpha2
            full((Cout, H)),                              # wr ++ ws (fused)
            full((Cout, 1)),                              # br ++ bs (fused)
        ],
        out_specs=pl.BlockSpec((Cout, L), lambda i: (0, i)),
    )

    out = pl.pallas_call(
        kernel,
        grid_spec=grid_spec,
        out_shape=jax.ShapeDtypeStruct((Cout, B * W), out_dtype),
        compiler_params=pltpu.CompilerParams(
            dimension_semantics=("parallel",),
            vmem_limit_bytes=vmem_limit),
    )(xt, w1c, b1, a1s, wd, bd, a2s, wrs, brs)

    # Un-fold: (Cout, B*W) -> (B, Cout, T_out); split res/skip with free slices.
    out = out.reshape(Cout, B, W)[:, :, :T_out]
    out = jnp.transpose(out, (1, 0, 2))
    if no_residual:
        return None, out
    return out[:, :Cio], out[:, Cio:]


# --------------------------- pure-JAX reference -----------------------------
def ref_conv_block(x, params, *, kernel_size, padding, dilation):
    w1, b1, a1, wd, bd, a2, wr, br, ws, bs = params
    a1 = jnp.reshape(a1, ())
    a2 = jnp.reshape(a2, ())
    h1 = jnp.einsum('hc,bct->bht', w1, x) + b1[None]
    h1 = jnp.where(h1 > 0, h1, a1 * h1)
    h1p = jnp.pad(h1, ((0, 0), (0, 0), (padding, padding)))
    T_out = h1p.shape[-1] - dilation * (kernel_size - 1)
    acc = 0.0
    for k in range(kernel_size):
        acc = acc + wd[None, :, k:k + 1] * h1p[:, :, k * dilation:k * dilation + T_out]
    h2 = acc + bd[None]
    h2 = jnp.where(h2 > 0, h2, a2 * h2)
    res = jnp.einsum('ch,bht->bct', wr, h2) + br[None]
    skp = jnp.einsum('ch,bht->bct', ws, h2) + bs[None]
    return res, skp


# --------------------------------- main -------------------------------------
if __name__ == "__main__":
    def make_params(key, Cio, H, K):
        ks = jax.random.split(key, 8)
        w1 = 0.1 * jax.random.normal(ks[0], (H, Cio), jnp.float32)
        b1 = 0.1 * jax.random.normal(ks[1], (H, 1), jnp.float32)
        a1 = jnp.full((1, 1), 0.25, jnp.float32)       # nn.PReLU() default
        wd = 0.1 * jax.random.normal(ks[2], (H, K), jnp.float32)
        bd = 0.1 * jax.random.normal(ks[3], (H, 1), jnp.float32)
        a2 = jnp.full((1, 1), 0.25, jnp.float32)
        wr = 0.1 * jax.random.normal(ks[4], (Cio, H), jnp.float32)
        br = 0.1 * jax.random.normal(ks[5], (Cio, 1), jnp.float32)
        ws = 0.1 * jax.random.normal(ks[6], (Cio, H), jnp.float32)
        bs = 0.1 * jax.random.normal(ks[7], (Cio, 1), jnp.float32)
        return (w1, b1, a1, wd, bd, a2, wr, br, ws, bs)

    key = jax.random.PRNGKey(0)
    k_x1, k_p1, k_x2, k_p2 = jax.random.split(key, 4)

    Cio, H = 8, 16

    # Case 1: "same" padding, dilation 2, fp32.
    B, T, K, dil = 2, 128, 3, 2
    pad = dil * (K - 1) // 2                      # -> T_out == T
    x = jax.random.normal(k_x1, (B, Cio, T), jnp.float32)
    params = make_params(k_p1, Cio, H, K)
    res, skp = conv_block(x, params, kernel_size=K, padding=pad, dilation=dil)
    jax.block_until_ready((res, skp))
    rr, sr = ref_conv_block(x, params, kernel_size=K, padding=pad, dilation=dil)
    assert jnp.allclose(res, rr, atol=1e-5, rtol=1e-5)
    assert jnp.allclose(skp, sr, atol=1e-5, rtol=1e-5)

    # Case 2: T not a multiple of 128 (exercises mask + output slice), batch=4
    #         folded into one 512-lane grid step.
    B2, T2, K2, dil2, pad2 = 4, 100, 3, 1, 1
    x2 = jax.random.normal(k_x2, (B2, Cio, T2), jnp.float32)
    params2 = make_params(k_p2, Cio, H, K2)
    res2, skp2 = conv_block(x2, params2, kernel_size=K2, padding=pad2,
                            dilation=dil2)
    jax.block_until_ready((res2, skp2))
    rr2, sr2 = ref_conv_block(x2, params2, kernel_size=K2, padding=pad2,
                              dilation=dil2)
    assert jnp.allclose(res2, rr2, atol=1e-5, rtol=1e-5)
    assert jnp.allclose(skp2, sr2, atol=1e-5, rtol=1e-5)

    # Case 3: bf16 I/O + MXU path (fp32 accumulation) -> ~1e-2-level error.
    res3, skp3 = conv_block(x, params, kernel_size=K, padding=pad, dilation=dil,
                            weight_dtype=jnp.bfloat16)
    jax.block_until_ready((res3, skp3))
    assert jnp.allclose(res3, rr, atol=3e-2, rtol=3e-2)
    assert jnp.allclose(skp3, sr, atol=3e-2, rtol=3e-2)

    # Case 4: no_residual=True (res_out is None in the PyTorch module).
    resn, skpn = conv_block(x, params, kernel_size=K, padding=pad, dilation=dil,
                            no_residual=True)
    assert resn is None
    jax.block_until_ready(skpn)
    assert jnp.allclose(skpn, sr, atol=1e-5, rtol=1e-5)

    print("KERNEL_OK")
</pallas_src>

<mosaic_0001>
module attributes {stable_mosaic.version = 11 : i64} {
  func.func @_conv_block_kernel(%arg0: i32, %arg1: memref<8x512xf32, #tpu.memory_space<vmem>>, %arg2: memref<16x8xf32, #tpu.memory_space<vmem>>, %arg3: memref<16x1xf32, #tpu.memory_space<vmem>>, %arg4: memref<1xf32, #tpu.memory_space<smem>>, %arg5: memref<16x3xf32, #tpu.memory_space<vmem>>, %arg6: memref<16x1xf32, #tpu.memory_space<vmem>>, %arg7: memref<1xf32, #tpu.memory_space<smem>>, %arg8: memref<16x16xf32, #tpu.memory_space<vmem>>, %arg9: memref<16x1xf32, #tpu.memory_space<vmem>>, %arg10: memref<16x512xf32, #tpu.memory_space<vmem>>) attributes {dimension_semantics = [#tpu.dimension_semantics<parallel>], iteration_bounds = array<i64: 1>, scalar_prefetch = 0 : i64, scratch_operands = 0 : i64, tpu.core_type = #tpu.core_type<tc>, window_params = [{transform_indices = @transform_0, window_bounds = array<i64: 8, 512>}, {pipeline_mode = #tpu.pipeline_mode<synchronous>, transform_indices = @transform_1, window_bounds = array<i64: 16, 8>}, {pipeline_mode = #tpu.pipeline_mode<synchronous>, transform_indices = @transform_2, window_bounds = array<i64: 16, 1>}, {transform_indices = @transform_3, window_bounds = array<i64: 1>}, {pipeline_mode = #tpu.pipeline_mode<synchronous>, transform_indices = @transform_4, window_bounds = array<i64: 16, 3>}, {pipeline_mode = #tpu.pipeline_mode<synchronous>, transform_indices = @transform_5, window_bounds = array<i64: 16, 1>}, {transform_indices = @transform_6, window_bounds = array<i64: 1>}, {pipeline_mode = #tpu.pipeline_mode<synchronous>, transform_indices = @transform_7, window_bounds = array<i64: 16, 16>}, {pipeline_mode = #tpu.pipeline_mode<synchronous>, transform_indices = @transform_8, window_bounds = array<i64: 16, 1>}, {transform_indices = @transform_9, window_bounds = array<i64: 16, 512>}]} {
    %c0 = arith.constant 0 : index
    %c0_0 = arith.constant 0 : index
    %0 = vector.load %arg2[%c0, %c0_0] : memref<16x8xf32, #tpu.memory_space<vmem>>, vector<16x8xf32>
    %c0_1 = arith.constant 0 : index
    %c0_2 = arith.constant 0 : index
    %1 = vector.load %arg3[%c0_1, %c0_2] : memref<16x1xf32, #tpu.memory_space<vmem>>, vector<16x1xf32>
    %c0_3 = arith.constant 0 : index
    %c0_4 = arith.constant 0 : index
    %2 = vector.load %arg6[%c0_3, %c0_4] : memref<16x1xf32, #tpu.memory_space<vmem>>, vector<16x1xf32>
    %c0_5 = arith.constant 0 : index
    %c0_6 = arith.constant 0 : index
    %3 = vector.load %arg8[%c0_5, %c0_6] : memref<16x16xf32, #tpu.memory_space<vmem>>, vector<16x16xf32>
    %c0_7 = arith.constant 0 : index
    %c0_8 = arith.constant 0 : index
    %4 = vector.load %arg9[%c0_7, %c0_8] : memref<16x1xf32, #tpu.memory_space<vmem>>, vector<16x1xf32>
    %c0_9 = arith.constant 0 : index
    %5 = memref.load %arg4[%c0_9] : memref<1xf32, #tpu.memory_space<smem>>
    %c0_10 = arith.constant 0 : index
    %6 = memref.load %arg7[%c0_10] : memref<1xf32, #tpu.memory_space<smem>>
    %c0_11 = arith.constant 0 : index
    %c0_12 = arith.constant 0 : index
    %7 = vector.load %arg1[%c0_11, %c0_12] : memref<8x512xf32, #tpu.memory_space<vmem>>, vector<8x512xf32>
    %cst = arith.constant dense<0.000000e+00> : vector<16x512xf32>
    %8 = tpu.matmul %0, %7, %cst {dimension_numbers = #tpu.dot_dimension_numbers<[1], [0], [0], [1], [0, 0, 1, 1], [], []>} : vector<16x8xf32>, vector<8x512xf32>, vector<16x512xf32> -> vector<16x512xf32>
    %9 = vector.broadcast %1 : vector<16x1xf32> to vector<16x512xf32>
    %10 = arith.addf %8, %9 : vector<16x512xf32>
    %cst_13 = arith.constant 0.000000e+00 : f32
    %11 = vector.broadcast %cst_13 : f32 to vector<16x512xf32>
    %12 = arith.cmpf ogt, %10, %11 : vector<16x512xf32>
    %13 = vector.broadcast %5 : f32 to vector<16x512xf32>
    %14 = arith.mulf %13, %10 : vector<16x512xf32>
    %15 = arith.select %12, %10, %14 : vector<16x512xi1>, vector<16x512xf32>
    %16 = tpu.iota {dimensions = array<i32: 1>} : vector<1x512xi32>
    %c256_i32 = arith.constant 256 : i32
    %c0_i32 = arith.constant 0 : i32
    %17 = arith.cmpi eq, %c256_i32, %c0_i32 : i32
    %c1_i32 = arith.constant 1 : i32
    %18 = arith.select %17, %c1_i32, %c256_i32 : i32
    %19 = vector.broadcast %18 : i32 to vector<1x512xi32>
    %20 = arith.remsi %16, %19 : vector<1x512xi32>
    %c0_i32_14 = arith.constant 0 : i32
    %21 = vector.broadcast %c0_i32_14 : i32 to vector<1x512xi32>
    %22 = arith.cmpi ne, %20, %21 : vector<1x512xi32>
    %c0_i32_15 = arith.constant 0 : i32
    %23 = vector.broadcast %c0_i32_15 : i32 to vector<1x512xi32>
    %24 = arith.cmpi slt, %20, %23 : vector<1x512xi32>
    %c0_i32_16 = arith.constant 0 : i32
    %25 = arith.cmpi slt, %18, %c0_i32_16 : i32
    %26 = vector.broadcast %25 : i1 to vector<1x512xi1>
    %27 = vector.broadcast %26 : vector<1x512xi1> to vector<1x512xi1>
    %28 = arith.xori %24, %27 : vector<1x512xi1>
    %29 = arith.andi %28, %22 : vector<1x512xi1>
    %30 = vector.broadcast %18 : i32 to vector<1x512xi32>
    %31 = arith.addi %20, %30 : vector<1x512xi32>
    %32 = arith.select %29, %31, %20 : vector<1x512xi1>, vector<1x512xi32>
    %c128_i32 = arith.constant 128 : i32
    %33 = vector.broadcast %c128_i32 : i32 to vector<1x512xi32>
    %34 = arith.cmpi slt, %32, %33 : vector<1x512xi32>
    %35 = arith.extui %34 : vector<1x512xi1> to vector<1x512xi32>
    %36 = arith.sitofp %35 : vector<1x512xi32> to vector<1x512xf32>
    %37 = vector.broadcast %36 : vector<1x512xf32> to vector<16x512xf32>
    %38 = arith.mulf %15, %37 : vector<16x512xf32>
    %c2_i32 = arith.constant 2 : i32
    %39 = tpu.dynamic_rotate %38 by %c2_i32 dim 1 : vector<16x512xf32>, i32 -> vector<16x512xf32>
    %c0_17 = arith.constant 0 : index
    %c0_18 = arith.constant 0 : index
    %40 = vector.load %arg5[%c0_17, %c0_18] : memref<16x3xf32, #tpu.memory_space<vmem>>, vector<16x1xf32>
    %41 = vector.broadcast %40 : vector<16x1xf32> to vector<16x512xf32>
    %42 = arith.mulf %41, %39 : vector<16x512xf32>
    %c0_19 = arith.constant 0 : index
    %c1 = arith.constant 1 : index
    %43 = vector.load %arg5[%c0_19, %c1] : memref<16x3xf32, #tpu.memory_space<vmem>>, vector<16x1xf32>
    %44 = vector.broadcast %43 : vector<16x1xf32> to vector<16x512xf32>
    %45 = arith.mulf %44, %38 : vector<16x512xf32>
    %46 = arith.addf %42, %45 : vector<16x512xf32>
    %c510_i32 = arith.constant 510 : i32
    %47 = tpu.dynamic_rotate %38 by %c510_i32 dim 1 : vector<16x512xf32>, i32 -> vector<16x512xf32>
    %c0_20 = arith.constant 0 : index
    %c2 = arith.constant 2 : index
    %48 = vector.load %arg5[%c0_20, %c2] : memref<16x3xf32, #tpu.memory_space<vmem>>, vector<16x1xf32>
    %49 = vector.broadcast %48 : vector<16x1xf32> to vector<16x512xf32>
    %50 = arith.mulf %49, %47 : vector<16x512xf32>
    %51 = arith.addf %46, %50 : vector<16x512xf32>
    %52 = vector.broadcast %2 : vector<16x1xf32> to vector<16x512xf32>
    %53 = arith.addf %51, %52 : vector<16x512xf32>
    %cst_21 = arith.constant 0.000000e+00 : f32
    %54 = vector.broadcast %cst_21 : f32 to vector<16x512xf32>
    %55 = arith.cmpf ogt, %53, %54 : vector<16x512xf32>
    %56 = vector.broadcast %6 : f32 to vector<16x512xf32>
    %57 = arith.mulf %56, %53 : vector<16x512xf32>
    %58 = arith.select %55, %53, %57 : vector<16x512xi1>, vector<16x512xf32>
    %cst_22 = arith.constant dense<0.000000e+00> : vector<16x512xf32>
    %59 = tpu.matmul %3, %58, %cst_22 {dimension_numbers = #tpu.dot_dimension_numbers<[1], [0], [0], [1], [0, 0, 1, 1], [], []>} : vector<16x16xf32>, vector<16x512xf32>, vector<16x512xf32> -> vector<16x512xf32>
    %60 = vector.broadcast %4 : vector<16x1xf32> to vector<16x512xf32>
    %61 = arith.addf %59, %60 : vector<16x512xf32>
    %c0_23 = arith.constant 0 : index
    %c0_24 = arith.constant 0 : index
    %62 = vector.load %arg10[%c0_23, %c0_24] : memref<16x512xf32, #tpu.memory_space<vmem>>, vector<16x512xf32>
    tpu.vector_store %arg10[%c0_23, %c0_24], %61 {strides = array<i32>} : memref<16x512xf32, #tpu.memory_space<vmem>>, vector<16x512xf32>,
    return
  }
  func.func @transform_0(%arg0: i32) -> (i32, i32) {
    %c0_i32 = arith.constant 0 : i32
    %c0_i32_0 = arith.constant 0 : i32
    return %c0_i32, %arg0 : i32, i32
  }
  func.func @transform_1(%arg0: i32) -> (i32, i32) {
    %c0_i32 = arith.constant 0 : i32
    %c0_i32_0 = arith.constant 0 : i32
    %c0_i32_1 = arith.constant 0 : i32
    return %c0_i32, %c0_i32_0 : i32, i32
  }
  func.func @transform_2(%arg0: i32) -> (i32, i32) {
    %c0_i32 = arith.constant 0 : i32
    %c0_i32_0 = arith.constant 0 : i32
    %c0_i32_1 = arith.constant 0 : i32
    return %c0_i32, %c0_i32_0 : i32, i32
  }
  func.func @transform_3(%arg0: i32) -> i32 {
    %c0_i32 = arith.constant 0 : i32
    %c0_i32_0 = arith.constant 0 : i32
    return %c0_i32 : i32
  }
  func.func @transform_4(%arg0: i32) -> (i32, i32) {
    %c0_i32 = arith.constant 0 : i32
    %c0_i32_0 = arith.constant 0 : i32
    %c0_i32_1 = arith.constant 0 : i32
    return %c0_i32, %c0_i32_0 : i32, i32
  }
  func.func @transform_5(%arg0: i32) -> (i32, i32) {
    %c0_i32 = arith.constant 0 : i32
    %c0_i32_0 = arith.constant 0 : i32
    %c0_i32_1 = arith.constant 0 : i32
    return %c0_i32, %c0_i32_0 : i32, i32
  }
  func.func @transform_6(%arg0: i32) -> i32 {
    %c0_i32 = arith.constant 0 : i32
    %c0_i32_0 = arith.constant 0 : i32
    return %c0_i32 : i32
  }
  func.func @transform_7(%arg0: i32) -> (i32, i32) {
    %c0_i32 = arith.constant 0 : i32
    %c0_i32_0 = arith.constant 0 : i32
    %c0_i32_1 = arith.constant 0 : i32
    return %c0_i32, %c0_i32_0 : i32, i32
  }
  func.func @transform_8(%arg0: i32) -> (i32, i32) {
    %c0_i32 = arith.constant 0 : i32
    %c0_i32_0 = arith.constant 0 : i32
    %c0_i32_1 = arith.constant 0 : i32
    return %c0_i32, %c0_i32_0 : i32, i32
  }
  func.func @transform_9(%arg0: i32) -> (i32, i32) {
    %c0_i32 = arith.constant 0 : i32
    %c0_i32_0 = arith.constant 0 : i32
    return %c0_i32, %arg0 : i32, i32
  }
}

</mosaic_0001>

<bundles_post_ra>
// kernel: tpu_custom_call.1
= control target key start
LH: loop header
LB: loop body
LE: loop exit
PB: predicated region body
PF: predicated region fallthrough
CT: control target
= control target key end

     0   :  { %vm61_vm0 = vcmask 64512   ;;  %v721_v5 = vmov 0.0   ;;  %s967_s0 = inlined_call_operand.vmem [shape: f32[8,512], index: 0, kind: input, shape index: {}]   ;;  %s968_s1 = inlined_call_operand.vmem [shape: f32[16,8], index: 1, kind: input, shape index: {}]   ;;  %s969_s2 = inlined_call_operand.vmem [shape: f32[16,1], index: 2, kind: input, shape index: {}]   ;;  %s970_s3 = inlined_call_operand.<no memory space> [shape: f32[1], index: 3, kind: input, shape index: {}]   ;;  %s971_s4 = inlined_call_operand.vmem [shape: f32[16,3], index: 4, kind: input, shape index: {}]   ;;  %s972_s5 = inlined_call_operand.vmem [shape: f32[16,1], index: 5, kind: input, shape index: {}]   ;;  %s973_s6 = inlined_call_operand.<no memory space> [shape: f32[1], index: 6, kind: input, shape index: {}]   ;;  %s974_s7 = inlined_call_operand.vmem [shape: f32[16,16], index: 7, kind: input, shape index: {}]   ;;  %s975_s8 = inlined_call_operand.vmem [shape: f32[16,1], index: 8, kind: input, shape index: {}]   ;;  %s976_s9 = inlined_call_operand.hbm [shape: f32[16,512], index: 9, kind: output, shape index: {}]  }
   0x1   :  { %v48_v0 = vld [vmem:[%s967_s0 + $0x8] sm:$0xff]  ;;  %v50_v1 = vld [vmem:[%s967_s0 + $0x18] sm:$0xff]  ;;  %v47_v2 = vld [vmem:[%s967_s0] sm:$0xff]  ;;  %132 = vmatprep.mubr.f32.mxu0 %v721_v5  ;;  %209 = vmatprep.mubr.f32.mxu1 %v721_v5 }
   0x2   :  { %98 = vmatprep.subr.mxu0 %v48_v0  ;;  %175 = vmatprep.subr.mxu1 %v50_v1  ;;  %v49_v3 = vld [vmem:[%s967_s0 + $0x10] sm:$0xff]  ;;  %v35_v4 = vld [vmem:[%s968_s1] sm:$0xff] }
   0x3   :  { %99 = vmatpush1.msra.mxu0 %v47_v2  ;;  %176 = vmatpush1.msra.mxu1 %v49_v3 }
   0x4   :  { %16 = vsyncpa [#allocation5], 0  ;;  %676 = vmatmul.mubr.msk.f32.vlgmr.msra.gmra.mxu0 %vm61_vm0, %v35_v4  ;;  %678 = vmatmul.mubr.msk.f32.vlgmr.msra.gmra.mxu1 %vm61_vm0, %v35_v4  ;;  %v38_v6 = vld [vmem:[%s969_s2 + $0x8] sm:$0xff]  ;;  %v722_v9 = vmov 0   ;;  %v37_v10 = vld [vmem:[%s969_s2] sm:$0xff]  ;;  %v723_v11 = vmov 1   ;;  %v230_v18 = vstv %s970_s3  ;;  %v247_v4 = vlaneseq }
   0x5   :  { %v346_v7 = vld [vmem:[%s971_s4 + $0x8] sm:$0xff]  ;;  %138 = vmatprep.mubr.f32.mxu0 %v721_v5  ;;  %215 = vmatprep.mubr.f32.mxu1 %v721_v5  ;;  %v345_v12 = vld [vmem:[%s971_s4] sm:$0xff]  ;;  %v724_v13 = vmov 2   ;;  %s725_s4 = smov 126   ;;  %s726_s3 = smov 2   ;;  %vm491_vm13 = vcmask 130048  }
   0x6   :  { %v36_v8 = vld [vmem:[%s968_s1 + $0x8] sm:$0xff]  ;;  %693 = vset.pattern.permute.xlu0 %v722_v9  ;;  %694 = vset.pattern.permute.xlu1 %v722_v9  ;;  %v39_v54 = vld [vmem:[%s972_s5] sm:$0xff] }
   0x7   :  { %58 = vperm.xlu0 %693, %v38_v6   ;;  %354 = vperm.xlu1 %694, %v346_v7   ;;  %v40_v14 = vld [vmem:[%s972_s5 + $0x8] sm:$0xff]  ;;  %v43_v55 = vld [vmem:[%s975_s8] sm:$0xff] }
   0x8   :  { %677 = vmatmul.mubr.msk.f32.gmra.mxu0 %vm61_vm0, %v36_v8  ;;  %679 = vmatmul.mubr.msk.f32.gmra.mxu1 %vm61_vm0, %v36_v8  ;;  %v44_v56 = vld [vmem:[%s975_s8 + $0x8] sm:$0xff]  ;;  %v879_v8 = vand.u32 127, %v247_v4 }
   0x9   :  { %562 = vmatprep.mubr.f32.mxu0 %v721_v5  ;;  %639 = vmatprep.mubr.f32.mxu1 %v721_v5 }
   0xa   :  { %vm336_vm9 = vcmp.lt.s32.totalorder %v879_v8, 2  ;;  %vm405_vm10 = vcmp.lt.s32.totalorder %v879_v8, 126 }
   0xb   :  { %53 = vperm.xlu0 %693, %v37_v10   ;;  %695 = vset.pattern.permute.xlu1 %v723_v11 }
   0xc   :  { %370 = vperm.xlu1 %695, %v346_v7  }
   0xf   :  { %696 = vset.pattern.permute.xlu0 %v724_v13 }
  0x10   :  { %366 = vperm.xlu1 %695, %v345_v12   ;;  %419 = vperm.xlu0 %696, %v346_v7  }
  0x14   :  { %415 = vperm.xlu0 %696, %v345_v12   ;;  %698 = vset.pattern.permute.xlu1 %v722_v9 }
  0x15   :  { %445 = vperm.xlu1 %698, %v40_v14  }
  0x18   :  { %697 = vset.pattern.permute.xlu0 %v722_v9 }
  0x19   :  { %349 = vperm.xlu0 %697, %v345_v12  }
  0x82   :  { %v59_v15 = vpop.permute.xlu0 %58  ;;  %v867_v57 = vpop.permute.xlu1 %354 }
  0x86   :  { %v54_v16 = vpop.permute.xlu0 %53 }
  0x87   :  { %v371_v59 = vpop.permute.xlu1 %370 }
  0x8b   :  { %v869_v58 = vpop.permute.xlu0 %419  ;;  %v367_v61 = vpop.permute.xlu1 %366 }
  0x8f   :  { %v871_v60 = vpop.permute.xlu0 %415 }
  0x90   :  { %v873_v62 = vpop.permute.xlu1 %445 }
  0x94   :  { %v350_v63 = vpop.permute.xlu0 %349 }
  0xc4   :  { %v134_v17 = vpop.f32.mrf.mxu0  ;;  %v211_v19 = vpop.f32.mrf.mxu1 }
  0xc5   :  { %v135_v20 = vadd.f32 %v134_v17, %v54_v16  ;;  %v212_v21 = vadd.f32 %v211_v19, %v54_v16 }
  0xc6   :  { %v136_v22 = vpop.f32.mrf.mxu0  ;;  %v213_v23 = vpop.f32.mrf.mxu1 }
  0xc7   :  { %v231_v24 = vmul.f32 %v230_v18, %v135_v20  ;;  %vm222_vm1 = vcmp.gt.f32.partialorder %v135_v20, 0.0  ;;  %v233_v27 = vmul.f32 %v230_v18, %v212_v21  ;;  %v137_v28 = vadd.f32 %v136_v22, %v54_v16 }
  0xc8   :  { %v140_v25 = vpop.f32.mrf.mxu0  ;;  %v217_v26 = vpop.f32.mrf.mxu1  ;;  %vm224_vm2 = vcmp.gt.f32.partialorder %v212_v21, 0.0  ;;  %v214_v32 = vadd.f32 %v213_v23, %v54_v16 }
  0xc9   :  { %v141_v29 = vadd.f32 %v140_v25, %v59_v15  ;;  %v218_v30 = vadd.f32 %v217_v26, %v59_v15  ;;  %v826_v31 = vsel %vm222_vm1, %v135_v20, %v231_v24  ;;  %v232_v33 = vmul.f32 %v230_v18, %v137_v28 }
  0xca   :  { %389 = vrot.lane.b32.xlu0 %v826_v31, %s725_s4  ;;  %320 = vrot.lane.b32.xlu1 %v826_v31, %s726_s3  ;;  %v832_v36 = vsel %vm224_vm2, %v212_v21, %v233_v27  ;;  %vm223_vm3 = vcmp.gt.f32.partialorder %v137_v28, 0.0  ;;  %v142_v37 = vpop.f32.mrf.mxu0  ;;  %v234_v38 = vmul.f32 %v230_v18, %v214_v32  ;;  %vm225_vm6 = vcmp.gt.f32.partialorder %v214_v32, 0.0  ;;  %v219_v43 = vpop.f32.mrf.mxu1 }
  0xcb   :  { %v235_v34 = vmul.f32 %v230_v18, %v141_v29  ;;  %v237_v35 = vmul.f32 %v230_v18, %v218_v30  ;;  %vm228_vm4 = vcmp.gt.f32.partialorder %v218_v30, 0.0  ;;  %vm226_vm5 = vcmp.gt.f32.partialorder %v141_v29, 0.0 }
  0xcc   :  { %v143_v39 = vadd.f32 %v142_v37, %v59_v15  ;;  %v240_v42 = vsel %vm223_vm3, %v137_v28, %v232_v33  ;;  %v220_v46 = vadd.f32 %v219_v43, %v59_v15  ;;  %v242_v47 = vsel %vm225_vm6, %v214_v32, %v234_v38 }
  0xcd   :  { %v838_v40 = vsel %vm228_vm4, %v218_v30, %v237_v35  ;;  %v840_v41 = vsel %vm226_vm5, %v141_v29, %v235_v34  ;;  %v313_v44 = vmul.f32 0.0, %v240_v42  ;;  %v315_v48 = vmul.f32 0.0, %v242_v47 }
  0xce   :  { %397 = vrot.lane.b32.xlu0 %v832_v36, %s725_s4  ;;  %328 = vrot.lane.b32.xlu1 %v832_v36, %s726_s3  ;;  %v236_v45 = vmul.f32 %v230_v18, %v143_v39  ;;  %vm227_vm7 = vcmp.gt.f32.partialorder %v143_v39, 0.0  ;;  %v238_v49 = vmul.f32 %v230_v18, %v220_v46  ;;  %vm229_vm8 = vcmp.gt.f32.partialorder %v220_v46, 0.0 }
  0xcf   :  { %v373_v18 = vmul.f32 %v367_v61, %v826_v31  ;;  %v375_v20 = vmul.f32 %v367_v61, %v832_v36  ;;  %v379_v21 = vmul.f32 %v371_v59, %v838_v40  ;;  %v377_v22 = vmul.f32 %v371_v59, %v840_v41 }
  0xd0   :  { %v244_v50 = vsel %vm227_vm7, %v143_v39, %v236_v45  ;;  %v246_v52 = vsel %vm229_vm8, %v220_v46, %v238_v49  ;;  %v374_v23 = vmul.f32 %v367_v61, %v313_v44  ;;  %v376_v24 = vmul.f32 %v367_v61, %v315_v48 }
  0xd1   :  { %v317_v51 = vmul.f32 0.0, %v244_v50  ;;  %v319_v53 = vmul.f32 0.0, %v246_v52  ;;  %v894_v27 = vstv %s973_s6 }
  0xd2   :  { %330 = vrot.lane.b32.xlu0 %v838_v40, %s726_s3  ;;  %322 = vrot.lane.b32.xlu1 %v840_v41, %s726_s3 }
  0xd3   :  { %v378_v25 = vmul.f32 %v371_v59, %v317_v51  ;;  %v380_v26 = vmul.f32 %v371_v59, %v319_v53 }
  0xd6   :  { %324 = vrot.lane.b32.xlu0 %v313_v44, %s726_s3  ;;  %391 = vrot.lane.b32.xlu1 %v840_v41, %s725_s4 }
  0xda   :  { %332 = vrot.lane.b32.xlu0 %v315_v48, %s726_s3  ;;  %399 = vrot.lane.b32.xlu1 %v838_v40, %s725_s4 }
  0xde   :  { %395 = vrot.lane.b32.xlu0 %v317_v51, %s725_s4  ;;  %393 = vrot.lane.b32.xlu1 %v313_v44, %s725_s4 }
  0xe2   :  { %403 = vrot.lane.b32.xlu0 %v319_v53, %s725_s4  ;;  %326 = vrot.lane.b32.xlu1 %v317_v51, %s726_s3 }
  0xe6   :  { %440 = vperm.xlu0 %697, %v39_v54   ;;  %334 = vrot.lane.b32.xlu1 %v319_v53, %s726_s3 }
  0xea   :  { %401 = vrot.lane.b32.xlu1 %v315_v48, %s725_s4 }
  0xee   :  { %483 = vperm.xlu1 %698, %v43_v55  }
  0xf2   :  { %488 = vperm.xlu1 %698, %v44_v56  }
 0x13c   :  { %v875_v0 = vpop.permute.xlu0 %389  ;;  %v321_v1 = vpop.permute.xlu1 %320 }
 0x140   :  { %v877_v2 = vpop.permute.xlu0 %397  ;;  %v329_v3 = vpop.permute.xlu1 %328 }
 0x144   :  { %v331_v6 = vpop.permute.xlu0 %330  ;;  %v323_v7 = vpop.permute.xlu1 %322 }
 0x148   :  { %v325_v9 = vpop.permute.xlu0 %324  ;;  %v392_v10 = vpop.permute.xlu1 %391 }
 0x149   :  { %v341_v13 = vsel %vm336_vm9, %v321_v1, %v325_v9  ;;  %v339_v14 = vsel %vm336_vm9, %v325_v9, %v329_v3 }
 0x14a   :  { %v358_v15 = vmul.f32 %v350_v63, %v341_v13  ;;  %v359_v19 = vmul.f32 %v350_v63, %v339_v14 }
 0x14c   :  { %v333_v11 = vpop.permute.xlu0 %332  ;;  %v400_v12 = vpop.permute.xlu1 %399  ;;  %v382_v28 = vadd.f32 %v374_v23, %v358_v15  ;;  %v383_v34 = vadd.f32 %v375_v20, %v359_v19 }
 0x14d   :  { %v337_v29 = vsel %vm336_vm9, %v329_v3, %v333_v11  ;;  %v343_v30 = vsel %vm336_vm9, %v333_v11, %v321_v1 }
 0x14e   :  { %v357_v42 = vmul.f32 %v350_v63, %v343_v30  ;;  %v360_v43 = vmul.f32 %v350_v63, %v337_v29 }
 0x150   :  { %v396_v16 = vpop.permute.xlu0 %395  ;;  %v394_v17 = vpop.permute.xlu1 %393  ;;  %v381_v63 = vadd.f32 %v373_v18, %v357_v42  ;;  %v384_v1 = vadd.f32 %v376_v24, %v360_v43 }
 0x151   :  { %v409_v31 = vsel %vm405_vm10, %v396_v16, %v400_v12  ;;  %v408_v38 = vsel %vm405_vm10, %v394_v17, %v877_v2  ;;  %v410_v39 = vsel %vm405_vm10, %v875_v0, %v394_v17  ;;  %v411_v44 = vsel %vm405_vm10, %v392_v10, %v396_v16 }
 0x152   :  { %v427_v45 = vmul.f32 %v869_v58, %v409_v31  ;;  %v422_v51 = vmul.f32 %v871_v60, %v410_v39  ;;  %v423_v52 = vmul.f32 %v871_v60, %v408_v38  ;;  %v426_v3 = vmul.f32 %v869_v58, %v411_v44 }
 0x154   :  { %v404_v32 = vpop.permute.xlu0 %403  ;;  %v327_v33 = vpop.permute.xlu1 %326  ;;  %v431_v13 = vadd.f32 %v423_v52, %v382_v28 }
 0x155   :  { %v407_v35 = vsel %vm405_vm10, %v400_v12, %v404_v32  ;;  %v340_v36 = vsel %vm336_vm9, %v327_v33, %v331_v6  ;;  %v342_v37 = vsel %vm336_vm9, %v323_v7, %v327_v33  ;;  %v413_v46 = vsel %vm405_vm10, %v404_v32, %v392_v10 }
 0x156   :  { %v362_v40 = vmul.f32 %v867_v57, %v342_v37  ;;  %v363_v41 = vmul.f32 %v867_v57, %v340_v36  ;;  %v428_v47 = vmul.f32 %v869_v58, %v407_v35  ;;  %v429_v4 = vmul.f32 %v869_v58, %v413_v46  ;;  %v41_v37 = vld [vmem:[%s974_s7] sm:$0xff] }
 0x158   :  { %v386_v48 = vadd.f32 %v378_v25, %v362_v40  ;;  %v387_v49 = vadd.f32 %v379_v21, %v363_v41  ;;  %v335_v50 = vpop.permute.xlu1 %334 }
 0x159   :  { %v338_v53 = vsel %vm336_vm9, %v331_v6, %v335_v50  ;;  %v344_v54 = vsel %vm336_vm9, %v335_v50, %v323_v7  ;;  %v430_v7 = vadd.f32 %v422_v51, %v381_v63 }
 0x15a   :  { %v435_v55 = vadd.f32 %v427_v45, %v386_v48  ;;  %v436_v56 = vadd.f32 %v428_v47, %v387_v49  ;;  %v361_v59 = vmul.f32 %v867_v57, %v344_v54  ;;  %v364_v61 = vmul.f32 %v867_v57, %v338_v53 }
 0x15c   :  { %v385_v9 = vadd.f32 %v377_v22, %v361_v59  ;;  %v388_v10 = vadd.f32 %v380_v26, %v364_v61  ;;  %v402_v11 = vpop.permute.xlu1 %401  ;;  %v453_v6 = vadd.f32 %v873_v62, %v435_v55  ;;  %v454_v12 = vadd.f32 %v873_v62, %v436_v56 }
 0x15d   :  { %v406_v14 = vsel %vm405_vm10, %v877_v2, %v402_v11  ;;  %v412_v57 = vsel %vm405_vm10, %v402_v11, %v875_v0 }
 0x15e   :  { %v434_v15 = vadd.f32 %v426_v3, %v385_v9  ;;  %v437_v16 = vadd.f32 %v429_v4, %v388_v10  ;;  %v424_v58 = vmul.f32 %v871_v60, %v406_v14  ;;  %v425_v17 = vmul.f32 %v871_v60, %v412_v57 }
 0x15f   :  { %vm461_vm11 = vcmp.gt.f32.partialorder %v453_v6, 0.0  ;;  %v470_v18 = vmul.f32 %v894_v27, %v453_v6  ;;  %vm462_vm12 = vcmp.gt.f32.partialorder %v454_v12, 0.0  ;;  %v471_v19 = vmul.f32 %v894_v27, %v454_v12 }
 0x160   :  { %v432_v20 = vadd.f32 %v424_v58, %v383_v34  ;;  %v433_v21 = vadd.f32 %v425_v17, %v384_v1  ;;  %v452_v2 = vadd.f32 %v873_v62, %v434_v15  ;;  %v455_v22 = vadd.f32 %v873_v62, %v437_v16 }
 0x161   :  { %v441_v8 = vpop.permute.xlu0 %440  ;;  %v478_v0 = vsel %vm461_vm11, %v453_v6, %v470_v18  ;;  %v479_v23 = vsel %vm462_vm12, %v454_v12, %v471_v19 }
 0x162   :  { %v448_v24 = vadd.f32 %v441_v8, %v430_v7  ;;  %v449_v25 = vadd.f32 %v441_v8, %v431_v13  ;;  %v450_v26 = vadd.f32 %v441_v8, %v432_v20  ;;  %v451_v60 = vadd.f32 %v441_v8, %v433_v21  ;;  %526 = vmatprep.subr.mxu0 %v478_v0 }
 0x163   :  { %vm460_vm14 = vcmp.gt.f32.partialorder %v452_v2, 0.0  ;;  %v469_v28 = vmul.f32 %v894_v27, %v452_v2  ;;  %vm463_vm15 = vcmp.gt.f32.partialorder %v455_v22, 0.0  ;;  %v472_v29 = vmul.f32 %v894_v27, %v455_v22 }
 0x164   :  { %vm457_vm0 = vcmp.gt.f32.partialorder %v449_v25, 0.0  ;;  %v466_v30 = vmul.f32 %v894_v27, %v449_v25  ;;  %vm459_vm1 = vcmp.gt.f32.partialorder %v451_v60, 0.0  ;;  %v468_v62 = vmul.f32 %v894_v27, %v451_v60 }
 0x165   :  { %v477_v31 = vsel %vm460_vm14, %v452_v2, %v469_v28  ;;  %v480_v32 = vsel %vm463_vm15, %v455_v22, %v472_v29  ;;  %vm456_vm2 = vcmp.gt.f32.partialorder %v448_v24, 0.0  ;;  %v465_v33 = vmul.f32 %v894_v27, %v448_v24 }
 0x166   :  { %527 = vmatpush1.msra.mxu0 %v477_v31  ;;  %603 = vmatprep.subr.mxu1 %v480_v32  ;;  %v474_v34 = vsel %vm457_vm0, %v449_v25, %v466_v30  ;;  %v476_v35 = vsel %vm459_vm1, %v451_v60, %v468_v62  ;;  %vm458_vm3 = vcmp.gt.f32.partialorder %v450_v26, 0.0  ;;  %v467_v36 = vmul.f32 %v894_v27, %v450_v26  ;;  %v42_v27 = vld [vmem:[%s974_s7 + $0x8] sm:$0xff]  ;;  %s727_s7 = smov [#allocation4]  }
 0x167   :  { %604 = vmatpush1.msra.mxu1 %v479_v23  ;;  %528 = vmatprep.subr.mxu0 %v474_v34  ;;  %v473_v38 = vsel %vm456_vm2, %v448_v24, %v465_v33  ;;  %s665_s18 = sshll.u32 %s727_s7, 4  ;;  %s666_s18 = int_to_ptr.vmem [resolvable:$true] %s665_s18 }
 0x168   :  { %605 = vmatprep.subr.mxu1 %v476_v35  ;;  %529 = vmatpush1.msra.mxu0 %v473_v38  ;;  %v475_v39 = vsel %vm458_vm3, %v450_v26, %v467_v36  ;;  %s699_s19 = scalar_lea.vmem %s666_s18, 1024  ;;  %p704_p1 = scmp.lt.s32.totalorder %s666_s18, %s666_s18 }
 0x169   :  { %606 = vmatpush1.msra.mxu1 %v475_v39  ;;  %680 = vmatmul.mubr.msk.f32.vlgmr.msra.gmra.mxu0 %vm491_vm13, %v41_v37  ;;  %v484_v40 = vpop.permute.xlu1 %483  ;;  %p700_p0 = scmp.ne.s32.totalorder %s666_s18, %s699_s19  ;;  %p705_p2 = scmp.lt.s32.totalorder %s699_s19, %s699_s19 }
 0x16a   :  { %682 = vmatmul.mubr.msk.f32.vlgmr.msra.gmra.mxu1 %vm491_vm13, %v41_v37  ;;  %568 = vmatprep.mubr.f32.mxu0 %v721_v5 }
 0x16b   :  { %645 = vmatprep.mubr.f32.mxu1 %v721_v5  ;;  %p706_p3 = por %p705_p2, %p704_p1 }
 0x16d   :  { %681 = vmatmul.mubr.msk.f32.gmra.mxu0 %vm491_vm13, %v42_v27  ;;  %v489_v48 = vpop.permute.xlu1 %488  ;;  %p707_p4 = pnand %p706_p3, %p700_p0 }
 0x16e   :  { %683 = vmatmul.mubr.msk.f32.gmra.mxu1 %vm491_vm13, %v42_v27 }
 0x229   :  { %v564_v41 = vpop.f32.mrf.mxu0 }
 0x22a   :  { %v565_v42 = vadd.f32 %v564_v41, %v484_v40  ;;  %v641_v43 = vpop.f32.mrf.mxu1 }
 0x22b   :  { %v642_v44 = vadd.f32 %v641_v43, %v484_v40  ;;  %v566_v45 = vpop.f32.mrf.mxu0 }
 0x22c   :  { %652 = vst [vmem:[#allocation4] sm:$0xff] %v565_v42  ;;  %v567_v46 = vadd.f32 %v566_v45, %v484_v40  ;;  %v643_v47 = vpop.f32.mrf.mxu1 }
 0x22d   :  { %654 = vst [vmem:[#allocation4 + $0x10] sm:$0xff] %v642_v44  ;;  %v644_v49 = vadd.f32 %v643_v47, %v484_v40  ;;  %v570_v50 = vpop.f32.mrf.mxu0 }
 0x22e   :  { %653 = vst [vmem:[#allocation4 + $0x8] sm:$0xff] %v567_v46  ;;  %v571_v51 = vadd.f32 %v570_v50, %v489_v48  ;;  %v647_v5 = vpop.f32.mrf.mxu1 }
 0x22f   :  { %655 = vst [vmem:[#allocation4 + $0x18] sm:$0xff] %v644_v49  ;;  %v648_v52 = vadd.f32 %v647_v5, %v489_v48  ;;  %v572_v53 = vpop.f32.mrf.mxu0 }
 0x230   :  { %656 = vst [vmem:[#allocation4 + $0x20] sm:$0xff] %v571_v51  ;;  %v573_v54 = vadd.f32 %v572_v53, %v489_v48  ;;  %v649_v55 = vpop.f32.mrf.mxu1 }
 0x231   :  { %658 = vst [vmem:[#allocation4 + $0x30] sm:$0xff] %v648_v52  ;;  %v650_v56 = vadd.f32 %v649_v55, %v489_v48 }
 0x232   :  { %657 = vst [vmem:[#allocation4 + $0x28] sm:$0xff] %v573_v54 }
 0x233   :  { %659 = vst [vmem:[#allocation4 + $0x38] sm:$0xff] %v650_v56 }
 0x234   :  { %710 = shalt.err (!%p707_p4)
}
 0x235   :  { %s728_s20 = smov 512   ;;  %s729_s0 = smov 32  }
 0x236   :  { %671 = dma.vmem_to_hbm [thread:$0]  %s666_s18, 1024, %s976_s9, [#allocation5], %s728_s20, %s728_s20, %s729_s0  }
 0x237   :  { %719 = dma.done.wait [#allocation5], 1024  }
 0x238   :  { %720 = vsyncadd [#allocation5], 4294966272 }
 0x239   :  { %675 = vsyncpa [#allocation5], 1 }

</bundles_post_ra>
